<compile_context>
chip_gen: v7x
topology: tpu7x:2x2x1
jax: 0.10.0
libtpu: 0.0.40
codegen_flags: <defaults>
</compile_context>

<pallas_src>
import functools

import jax
import jax.numpy as jnp
from jax.experimental import pallas as pl
from jax.experimental.pallas import tpu as pltpu


def _squeeze_excite_kernel(hw_total, x_ref, w1t_ref, b1_ref, w2t_ref, b2_ref,
                           s_ref, acc_ref):
    """Grid (B, n_hw). Accumulates sum over spatial tiles into acc_ref; on the
    last tile of each batch element runs the excitation MLP and writes s."""
    k = pl.program_id(1)

    @pl.when(k == 0)
    def _init():
        acc_ref[...] = jnp.zeros_like(acc_ref)

    x = x_ref[...].astype(jnp.float32)                  # (1, THW, C)
    acc_ref[...] += jnp.sum(x, axis=1)                  # (1, C) f32 accumulate

    @pl.when(k == pl.num_programs(1) - 1)
    def _excite():
        v = acc_ref[...] * (1.0 / hw_total)             # (1, C) global avg pool
        h = jnp.dot(v, w1t_ref[...], preferred_element_type=jnp.float32)
        h = jnp.maximum(h + b1_ref[...], 0.0)           # (1, C_r) ReLU
        s = jnp.dot(h, w2t_ref[...], preferred_element_type=jnp.float32)
        s = jax.nn.sigmoid(s + b2_ref[...])             # (1, C)
        s_ref[...] = s[:, None, :].astype(s_ref.dtype)  # (1, 1, C)


def _scale_kernel(x_ref, s_ref, o_ref):
    """Grid (B, n_hw). y = x * s, s broadcast along the HW (sublane) axis."""
    x = x_ref[...].astype(jnp.float32)                  # (1, THW, C)
    o_ref[...] = (x * s_ref[...]).astype(o_ref.dtype)   # lane-dense store


def _pick_hw_tile(hw, c, itemsize, max_bytes):
    """Largest spatial tile (rows of the (HW, C) slab) that divides HW, is a
    multiple of 8 when possible, and keeps one block under max_bytes."""
    max_rows = max(8, max_bytes // max(1, c * itemsize))
    if hw <= max_rows:
        return hw
    divisors = [d for d in range(1, hw + 1) if hw % d == 0 and d <= max_rows]
    mult8 = [d for d in divisors if d % 8 == 0]
    return max(mult8) if mult8 else max(divisors)


def se_block(x_nchw, w1, b1, w2, b2, *, hw_tile_bytes=2 << 20):
    """x_nchw: (B, C, H, W). Torch nn.Linear weight layout:
    w1: (C//r, C), b1: (C//r,), w2: (C, C//r), b2: (C,)."""
    B, C, H, W = x_nchw.shape
    HW = H * W
    C_r = w1.shape[0]
    out_dtype = x_nchw.dtype

    # Channels-last layout (layout plumbing, done once in the wrapper).
    x = jnp.transpose(x_nchw.reshape(B, C, HW), (0, 2, 1))      # (B, HW, C)

    # Pre-transpose weights so the kernel has straight MXU feeds (no .T).
    w1t = jnp.transpose(w1).astype(jnp.float32)                 # (C, C_r)
    w2t = jnp.transpose(w2).astype(jnp.float32)                 # (C_r, C)
    b1_2d = b1.reshape(1, C_r).astype(jnp.float32)
    b2_2d = b2.reshape(1, C).astype(jnp.float32)

    thw = _pick_hw_tile(HW, C, x.dtype.itemsize, hw_tile_bytes)
    n_hw = HW // thw
    vmem_limit = 32 * 1024 * 1024                               # safe on v5e/v6e/v7x

    # ---- pass 1: squeeze (tiled spatial reduction) + excite MLP -> s (B,1,C)
    s3 = pl.pallas_call(
        functools.partial(_squeeze_excite_kernel, float(HW)),
        out_shape=jax.ShapeDtypeStruct((B, 1, C), jnp.float32),
        grid=(B, n_hw),
        in_specs=[
            pl.BlockSpec((1, thw, C), lambda b, k: (b, k, 0)),   # x tiles
            pl.BlockSpec((C, C_r), lambda b, k: (0, 0)),         # resident w1t
            pl.BlockSpec((1, C_r), lambda b, k: (0, 0)),         # resident b1
            pl.BlockSpec((C_r, C), lambda b, k: (0, 0)),         # resident w2t
            pl.BlockSpec((1, C), lambda b, k: (0, 0)),           # resident b2
        ],
        out_specs=pl.BlockSpec((1, 1, C), lambda b, k: (b, 0, 0)),
        scratch_shapes=[pltpu.VMEM((1, C), jnp.float32)],        # f32 sum acc
        compiler_params=pltpu.CompilerParams(
            dimension_semantics=("parallel", "arbitrary"),
            vmem_limit_bytes=vmem_limit,
        ),
    )(x, w1t, b1_2d, w2t, b2_2d)

    # ---- pass 2: tiled elementwise scale y = x * s -------------------------
    y = pl.pallas_call(
        _scale_kernel,
        out_shape=jax.ShapeDtypeStruct((B, HW, C), out_dtype),
        grid=(B, n_hw),
        in_specs=[
            pl.BlockSpec((1, thw, C), lambda b, k: (b, k, 0)),   # x tiles
            pl.BlockSpec((1, 1, C), lambda b, k: (b, 0, 0)),     # per-batch s
        ],
        out_specs=pl.BlockSpec((1, thw, C), lambda b, k: (b, k, 0)),
        compiler_params=pltpu.CompilerParams(
            dimension_semantics=("parallel", "parallel"),
            vmem_limit_bytes=vmem_limit,
        ),
    )(x, s3)

    return jnp.transpose(y, (0, 2, 1)).reshape(B, C, H, W)


def se_block_reference(x_nchw, w1, b1, w2, b2):
    """Pure-JAX reference mirroring the PyTorch forward."""
    v = jnp.mean(x_nchw, axis=(2, 3))                            # (B, C)
    h = jnp.maximum(v @ w1.T + b1, 0.0)                          # (B, C//r)
    s = jax.nn.sigmoid(h @ w2.T + b2)                            # (B, C)
    return x_nchw * s[:, :, None, None]


if __name__ == "__main__":
    B, C, H, W = 2, 4, 16, 16
    reduction_ratio = 2
    C_r = C // reduction_ratio

    key = jax.random.PRNGKey(0)
    kx, k1, k2, k3, k4 = jax.random.split(key, 5)

    x = jax.random.normal(kx, (B, C, H, W), dtype=jnp.float32)
    w1 = jax.random.normal(k1, (C_r, C), dtype=jnp.float32) * 0.1
    b1 = jax.random.normal(k2, (C_r,), dtype=jnp.float32) * 0.1
    w2 = jax.random.normal(k3, (C, C_r), dtype=jnp.float32) * 0.1
    b2 = jax.random.normal(k4, (C,), dtype=jnp.float32) * 0.1

    y = jax.block_until_ready(se_block(x, w1, b1, w2, b2))
    y_ref = se_block_reference(x, w1, b1, w2, b2)

    assert y.shape == (B, C, H, W)
    assert jnp.allclose(y, y_ref, atol=1e-5, rtol=1e-4), "mismatch vs reference"

    print("KERNEL_OK")
</pallas_src>

<mosaic_0001>
module attributes {stable_mosaic.version = 11 : i64} {
  func.func @_squeeze_excite_kernel(%arg0: i32, %arg1: i32, %arg2: memref<1x256x4xf32, #tpu.memory_space<vmem>>, %arg3: memref<4x2xf32, #tpu.memory_space<vmem>>, %arg4: memref<1x2xf32, #tpu.memory_space<vmem>>, %arg5: memref<2x4xf32, #tpu.memory_space<vmem>>, %arg6: memref<1x4xf32, #tpu.memory_space<vmem>>, %arg7: memref<1x1x4xf32, #tpu.memory_space<vmem>>, %arg8: memref<1x4xf32, #tpu.memory_space<vmem>>) attributes {dimension_semantics = [#tpu.dimension_semantics<parallel>, #tpu.dimension_semantics<arbitrary>], iteration_bounds = array<i64: 2, 1>, scalar_prefetch = 0 : i64, scratch_operands = 1 : i64, tpu.core_type = #tpu.core_type<tc>, window_params = [{transform_indices = @transform_0, window_bounds = array<i64: 1, 256, 4>}, {pipeline_mode = #tpu.pipeline_mode<synchronous>, transform_indices = @transform_1, window_bounds = array<i64: 4, 2>}, {pipeline_mode = #tpu.pipeline_mode<synchronous>, transform_indices = @transform_2, window_bounds = array<i64: 1, 2>}, {pipeline_mode = #tpu.pipeline_mode<synchronous>, transform_indices = @transform_3, window_bounds = array<i64: 2, 4>}, {pipeline_mode = #tpu.pipeline_mode<synchronous>, transform_indices = @transform_4, window_bounds = array<i64: 1, 4>}, {transform_indices = @transform_5, window_bounds = array<i64: 1, 1, 4>}]} {
    %c0_i32 = arith.constant 0 : i32
    %0 = arith.cmpi eq, %arg1, %c0_i32 : i32
    %1 = arith.extui %0 : i1 to i32
    %c0_i32_0 = arith.constant 0 : i32
    %2 = arith.cmpi ne, %1, %c0_i32_0 : i32
    scf.if %2 {
      %cst_9 = arith.constant 0.000000e+00 : f32
      %11 = vector.broadcast %cst_9 : f32 to vector<1x4xf32>
      %c0_10 = arith.constant 0 : index
      %c0_11 = arith.constant 0 : index
      %12 = vector.load %arg8[%c0_10, %c0_11] : memref<1x4xf32, #tpu.memory_space<vmem>>, vector<1x4xf32>
      tpu.vector_store %arg8[%c0_10, %c0_11], %11 {strides = array<i32>} : memref<1x4xf32, #tpu.memory_space<vmem>>, vector<1x4xf32>,
    } else {
    }
    %c0 = arith.constant 0 : index
    %c0_1 = arith.constant 0 : index
    %c0_2 = arith.constant 0 : index
    %3 = vector.load %arg2[%c0, %c0_1, %c0_2] : memref<1x256x4xf32, #tpu.memory_space<vmem>>, vector<1x256x4xf32>
    %c0_3 = arith.constant 0 : index
    %c0_4 = arith.constant 0 : index
    %4 = vector.load %arg8[%c0_3, %c0_4] : memref<1x4xf32, #tpu.memory_space<vmem>>, vector<1x4xf32>
    %cst = arith.constant dense<0.000000e+00> : vector<1x4xf32>
    %5 = vector.multi_reduction <add>, %3, %cst [1] : vector<1x256x4xf32> to vector<1x4xf32>
    %6 = arith.addf %4, %5 : vector<1x4xf32>
    %c0_5 = arith.constant 0 : index
    %c0_6 = arith.constant 0 : index
    %7 = vector.load %arg8[%c0_5, %c0_6] : memref<1x4xf32, #tpu.memory_space<vmem>>, vector<1x4xf32>
    tpu.vector_store %arg8[%c0_5, %c0_6], %6 {strides = array<i32>} : memref<1x4xf32, #tpu.memory_space<vmem>>, vector<1x4xf32>,
    %c0_i32_7 = arith.constant 0 : i32
    %8 = arith.cmpi eq, %arg1, %c0_i32_7 : i32
    %9 = arith.extui %8 : i1 to i32
    %c0_i32_8 = arith.constant 0 : i32
    %10 = arith.cmpi ne, %9, %c0_i32_8 : i32
    scf.if %10 {
      %c0_9 = arith.constant 0 : index
      %c0_10 = arith.constant 0 : index
      %11 = vector.load %arg8[%c0_9, %c0_10] : memref<1x4xf32, #tpu.memory_space<vmem>>, vector<1x4xf32>
      %cst_11 = arith.constant 3.906250e-03 : f32
      %12 = vector.broadcast %cst_11 : f32 to vector<1x4xf32>
      %13 = arith.mulf %11, %12 : vector<1x4xf32>
      %c0_12 = arith.constant 0 : index
      %c0_13 = arith.constant 0 : index
      %14 = vector.load %arg3[%c0_12, %c0_13] : memref<4x2xf32, #tpu.memory_space<vmem>>, vector<4x2xf32>
      %cst_14 = arith.constant dense<0.000000e+00> : vector<1x2xf32>
      %15 = tpu.matmul %13, %14, %cst_14 {dimension_numbers = #tpu.dot_dimension_numbers<[1], [0], [0], [1], [0, 0, 1, 1], [], []>} : vector<1x4xf32>, vector<4x2xf32>, vector<1x2xf32> -> vector<1x2xf32>
      %c0_15 = arith.constant 0 : index
      %c0_16 = arith.constant 0 : index
      %16 = vector.load %arg4[%c0_15, %c0_16] : memref<1x2xf32, #tpu.memory_space<vmem>>, vector<1x2xf32>
      %17 = arith.addf %15, %16 : vector<1x2xf32>
      %cst_17 = arith.constant 0.000000e+00 : f32
      %18 = vector.broadcast %cst_17 : f32 to vector<1x2xf32>
      %19 = arith.maximumf %17, %18 : vector<1x2xf32>
      %c0_18 = arith.constant 0 : index
      %c0_19 = arith.constant 0 : index
      %20 = vector.load %arg5[%c0_18, %c0_19] : memref<2x4xf32, #tpu.memory_space<vmem>>, vector<2x4xf32>
      %cst_20 = arith.constant dense<0.000000e+00> : vector<1x4xf32>
      %21 = tpu.matmul %19, %20, %cst_20 {dimension_numbers = #tpu.dot_dimension_numbers<[1], [0], [0], [1], [0, 0, 1, 1], [], []>} : vector<1x2xf32>, vector<2x4xf32>, vector<1x4xf32> -> vector<1x4xf32>
      %c0_21 = arith.constant 0 : index
      %c0_22 = arith.constant 0 : index
      %22 = vector.load %arg6[%c0_21, %c0_22] : memref<1x4xf32, #tpu.memory_space<vmem>>, vector<1x4xf32>
      %23 = arith.addf %21, %22 : vector<1x4xf32>
      %24 = arith.negf %23 : vector<1x4xf32>
      %25 = math.exp %24 : vector<1x4xf32>
      %cst_23 = arith.constant 1.000000e+00 : f32
      %26 = vector.broadcast %cst_23 : f32 to vector<1x4xf32>
      %27 = arith.addf %26, %25 : vector<1x4xf32>
      %28 = arith.divf %26, %27 : vector<1x4xf32>
      %29 = vector.shape_cast %28 : vector<1x4xf32> to vector<1x1x4xf32>
      %c0_24 = arith.constant 0 : index
      %c0_25 = arith.constant 0 : index
      %c0_26 = arith.constant 0 : index
      %30 = vector.load %arg7[%c0_24, %c0_25, %c0_26] : memref<1x1x4xf32, #tpu.memory_space<vmem>>, vector<1x1x4xf32>
      tpu.vector_store %arg7[%c0_24, %c0_25, %c0_26], %29 {strides = array<i32>} : memref<1x1x4xf32, #tpu.memory_space<vmem>>, vector<1x1x4xf32>,
    } else {
    }
    return
  }
  func.func @transform_0(%arg0: i32, %arg1: i32) -> (i32, i32, i32) {
    %c0_i32 = arith.constant 0 : i32
    %c0_i32_0 = arith.constant 0 : i32
    return %arg0, %arg1, %c0_i32 : i32, i32, i32
  }
  func.func @transform_1(%arg0: i32, %arg1: i32) -> (i32, i32) {
    %c0_i32 = arith.constant 0 : i32
    %c0_i32_0 = arith.constant 0 : i32
    %c0_i32_1 = arith.constant 0 : i32
    return %c0_i32, %c0_i32_0 : i32, i32
  }
  func.func @transform_2(%arg0: i32, %arg1: i32) -> (i32, i32) {
    %c0_i32 = arith.constant 0 : i32
    %c0_i32_0 = arith.constant 0 : i32
    %c0_i32_1 = arith.constant 0 : i32
    return %c0_i32, %c0_i32_0 : i32, i32
  }
  func.func @transform_3(%arg0: i32, %arg1: i32) -> (i32, i32) {
    %c0_i32 = arith.constant 0 : i32
    %c0_i32_0 = arith.constant 0 : i32
    %c0_i32_1 = arith.constant 0 : i32
    return %c0_i32, %c0_i32_0 : i32, i32
  }
  func.func @transform_4(%arg0: i32, %arg1: i32) -> (i32, i32) {
    %c0_i32 = arith.constant 0 : i32
    %c0_i32_0 = arith.constant 0 : i32
    %c0_i32_1 = arith.constant 0 : i32
    return %c0_i32, %c0_i32_0 : i32, i32
  }
  func.func @transform_5(%arg0: i32, %arg1: i32) -> (i32, i32, i32) {
    %c0_i32 = arith.constant 0 : i32
    %c0_i32_0 = arith.constant 0 : i32
    %c0_i32_1 = arith.constant 0 : i32
    return %arg0, %c0_i32, %c0_i32_0 : i32, i32, i32
  }
}

</mosaic_0001>

<bundles_post_ra>
// kernel: tpu_custom_call.1
= control target key start
LH: loop header
LB: loop body
LE: loop exit
PB: predicated region body
PF: predicated region fallthrough
CT: control target
= control target key end

     0   :  { %10 = vsyncpa [#allocation4], 0  ;;  %s1014_s0 = inlined_call_operand.vmem [shape: f32[2,256,4], index: 0, kind: input, shape index: {}]   ;;  %s1015_s1 = inlined_call_operand.vmem [shape: f32[4,2], index: 1, kind: input, shape index: {}]   ;;  %s1016_s2 = inlined_call_operand.vmem [shape: f32[1,2], index: 2, kind: input, shape index: {}]   ;;  %s1017_s3 = inlined_call_operand.vmem [shape: f32[2,4], index: 3, kind: input, shape index: {}]   ;;  %s1018_s4 = inlined_call_operand.vmem [shape: f32[1,4], index: 4, kind: input, shape index: {}]   ;;  %s1019_s5 = inlined_call_operand.hbm [shape: f32[2,1,4], index: 5, kind: output, shape index: {}]  }
   0x1   :  { %12 = vsyncpa [#allocation4 + $0x1], 0  ;;  %s820_s18 = smov 0   ;;  %s822_s19 = smov 0  }
   0x2   :  { %s824_s20 = smov 0   ;;  %s826_s21 = smov 0  }
   0x3   :  { %s828_s22 = smov 0   ;;  %s830_s23 = smov 0  }
   0x4 LB: > { %s616_s24 = sadd.s32 4294967295, %s785_s23   ;;  %s617_s25 = sadd.s32 4294967294, %s785_s23   ;;  %s785_s23 = sphi %s830_s23, %s18_s23   ;;  %s781_s22 = sphi %s828_s22, %s1026_s22   ;;  %s777_s21 = sphi %s826_s21, %s1025_s21   ;;  %s773_s20 = sphi %s824_s20, %s1024_s20   ;;  %s769_s19 = sphi %s822_s19, %s1023_s19   ;;  %s765_s18 = sphi %s820_s18, %s1022_s18  }
   0x5   : > { %s30_s26 = sadd.s32 1, %s781_s22  ;;  %s149_s27 = sadd.s32 1, %s773_s20 }
   0x6   : > { %p32_p0 = scmp.ge.s32.totalorder %s30_s26, 2  ;;  %p159_p1 = scmp.ne.s32.totalorder %s773_s20, %s769_s19 }
   0x7   : > { %p160_p2 = scmp.eq.s32.totalorder %s616_s24, 1  ;;  %p165_p3 = scmp.ne.s32.totalorder %s769_s19, %s765_s18 }
   0x8   : > { %s1028_s26 = smov (%p32_p0, %s30_s26), 0  ;;  %p166_p5 = scmp.eq.s32.totalorder %s617_s25, 1 }
   0x9   : > { %p860_p4 = por %p160_p2, %p159_p1  ;;  %s146_s29 = ssub.s32 %s781_s22, %s1028_s26 }
   0xa   : > { %p620_p6 = scmp.ge.s32.totalorder %s785_s23, 1  ;;  %p147_p7 = scmp.eq.s32.totalorder %s146_s29, 0 }
   0xb   : > { %p867_p8 = por %p166_p5, %p165_p3  ;;  %p209_p9 = scmp.lt.s32.totalorder %s785_s23, 3 }
   0xc   : > { %s873_s6 = scalar_select %p147_p7, %s773_s20, %s149_s27  }
   0xd   : > { %p210_p10 = pnand %p620_p6, %p209_p9 }
   0xe   : > { %p241_p11 = scmp.lt.s32.totalorder (!%p210_p10), %s777_s21, 1  ;;  %vm254_vm0 = vcmask (!%p210_p10), 24576   ;;  %v367_v0 = vld [vmem:[%s1015_s1] sm:$0xf] (!%p210_p10)  ;;  %v787_v1 = vmov (!%p210_p10), 0.0   ;;  %vm372_vm1 = vcmask (!%p210_p10), 1043456  }
   0xf   : > { %213 = sbr.rel (%p210_p10) target bundleno = 584 (0x248), region = 40  ;;  %255 = vst.msk [vmem:[#allocation2] sm:$0x1] (!%p210_p10), %vm254_vm0, %v787_v1  ;;  %636 = vmatprep.subr.mxu0 (!%p210_p10), %v787_v1  ;;  %641 = vmatprep.subr.mxu1 (!%p210_p10), %v787_v1  ;;  %vm788_vm2 = vmmov (!%p210_p10), 0   ;;  %vm289_vm3 = vcmask (!%p210_p10), 31744   ;;  %vm453_vm4 = vcmask (!%p210_p10), 1041408  }
  0x10   : > { %637 = vmatpush3.msk.msra.mxu0 (!%p210_p10), %vm372_vm1, %v367_v0  ;;  %638 = vmatprep.mubr.msk.f32.mxu0 (!%p210_p10), %vm788_vm2, %v787_v1  ;;  %vm449_vm5 = vcmask (!%p210_p10), 15360   ;;  %s238_s27 = sand.u32 (!%p210_p10), 1, %s769_s19   ;;  %s628_s29 = sshll.u32 (!%p210_p10), %s777_s21, 4 }
  0x11   : > { %643 = vmatprep.mubr.msk.f32.mxu1 (!%p210_p10), %vm788_vm2, %v787_v1  ;;  %s239_s7 = scalar_lea.vmem (!%p210_p10), [#allocation3], %s238_s27  ;;  %s966_s11 = scalar_lea.hbm (!%p210_p10), %s1019_s5, %s628_s29 }
  0x12   : > { %s547_s8 = sshll.u32 (!%p210_p10), %s239_s7, 4  ;;  %s535_s12 = scalar_lea.sflag (!%p210_p10), [#allocation4], %s238_s27  ;;  %s968_s8 = int_to_ptr.vmem [resolvable:$true] %s547_s8 }
  0x16   : > { %s242_s9 = scalar_select %p241_p11, %s777_s21, 1 }
  0x17   : > { %s789_s21 = smov [#allocation3]  }
  0x18   : > { %s631_s10 = sshll.u32 %s242_s9, 8  ;;  %s711_s14 = sshll.u32 %s789_s21, 4  ;;  %s712_s14 = int_to_ptr.vmem [resolvable:$false] %s711_s14 }
  0x19   : > { %s884_s13 = scalar_lea.vmem %s1014_s0, %s631_s10  ;;  %s713_s15 = scalar_lea.vmem %s712_s14, 32 }
  0x1a   : > { %v256_v2 = vld [vmem:[%s884_s13] sm:$0xff]  ;;  %v257_v3 = vld [vmem:[%s884_s13 + $0x8] sm:$0xff]  ;;  %v258_v4 = vld [vmem:[%s884_s13 + $0x10] sm:$0xff]  ;;  %p714_p1 = scmp.lt.s32.totalorder %s968_s8, %s712_s14 }
  0x1b   : > { %v259_v5 = vld [vmem:[%s884_s13 + $0x18] sm:$0xff]  ;;  %v290_v6 = vsel %vm289_vm3, %v256_v2, 0.0  ;;  %v291_v7 = vsel %vm289_vm3, %v257_v3, 0.0  ;;  %v293_v8 = vsel %vm289_vm3, %v258_v4, 0.0  ;;  %v260_v9 = vld [vmem:[%s884_s13 + $0x20] sm:$0xff]  ;;  %v261_v12 = vld [vmem:[%s884_s13 + $0x28] sm:$0xff] }
  0x1c   : > { %v292_v10 = vadd.f32 %v291_v7, %v290_v6  ;;  %v295_v11 = vsel %vm289_vm3, %v259_v5, 0.0  ;;  %v297_v14 = vsel %vm289_vm3, %v260_v9, 0.0  ;;  %v262_v15 = vld [vmem:[%s884_s13 + $0x30] sm:$0xff]  ;;  %v299_v17 = vsel %vm289_vm3, %v261_v12, 0.0  ;;  %v263_v18 = vld [vmem:[%s884_s13 + $0x38] sm:$0xff]  ;;  %v264_v21 = vld [vmem:[%s884_s13 + $0x40] sm:$0xff] }
  0x1d   : > { %v301_v20 = vsel %vm289_vm3, %v262_v15, 0.0  ;;  %v303_v23 = vsel %vm289_vm3, %v263_v18, 0.0  ;;  %v265_v24 = vld [vmem:[%s884_s13 + $0x48] sm:$0xff]  ;;  %v305_v26 = vsel %vm289_vm3, %v264_v21, 0.0  ;;  %v266_v27 = vld [vmem:[%s884_s13 + $0x50] sm:$0xff]  ;;  %v267_v30 = vld [vmem:[%s884_s13 + $0x58] sm:$0xff] }
  0x1e   : > { %v294_v13 = vadd.f32 %v293_v8, %v292_v10  ;;  %v307_v29 = vsel %vm289_vm3, %v265_v24, 0.0  ;;  %v309_v32 = vsel %vm289_vm3, %v266_v27, 0.0  ;;  %v268_v33 = vld [vmem:[%s884_s13 + $0x60] sm:$0xff]  ;;  %v311_v35 = vsel %vm289_vm3, %v267_v30, 0.0  ;;  %v269_v36 = vld [vmem:[%s884_s13 + $0x68] sm:$0xff]  ;;  %v270_v39 = vld [vmem:[%s884_s13 + $0x70] sm:$0xff] }
  0x1f   : > { %v313_v38 = vsel %vm289_vm3, %v268_v33, 0.0  ;;  %v315_v41 = vsel %vm289_vm3, %v269_v36, 0.0  ;;  %v271_v42 = vld [vmem:[%s884_s13 + $0x78] sm:$0xff]  ;;  %v317_v44 = vsel %vm289_vm3, %v270_v39, 0.0  ;;  %v272_v45 = vld [vmem:[%s884_s13 + $0x80] sm:$0xff]  ;;  %v273_v48 = vld [vmem:[%s884_s13 + $0x88] sm:$0xff] }
  0x20   : > { %v296_v16 = vadd.f32 %v295_v11, %v294_v13  ;;  %v319_v47 = vsel %vm289_vm3, %v271_v42, 0.0  ;;  %v321_v50 = vsel %vm289_vm3, %v272_v45, 0.0  ;;  %v274_v51 = vld [vmem:[%s884_s13 + $0x90] sm:$0xff]  ;;  %v323_v53 = vsel %vm289_vm3, %v273_v48, 0.0  ;;  %v275_v54 = vld [vmem:[%s884_s13 + $0x98] sm:$0xff]  ;;  %v276_v57 = vld [vmem:[%s884_s13 + $0xa0] sm:$0xff] }
  0x21   : > { %v325_v56 = vsel %vm289_vm3, %v274_v51, 0.0  ;;  %v327_v59 = vsel %vm289_vm3, %v275_v54, 0.0  ;;  %v277_v60 = vld [vmem:[%s884_s13 + $0xa8] sm:$0xff]  ;;  %v329_v62 = vsel %vm289_vm3, %v276_v57, 0.0  ;;  %v278_v63 = vld [vmem:[%s884_s13 + $0xb0] sm:$0xff]  ;;  %v279_v2 = vld [vmem:[%s884_s13 + $0xb8] sm:$0xff] }
  0x22   : > { %v298_v19 = vadd.f32 %v297_v14, %v296_v16  ;;  %v331_v1 = vsel %vm289_vm3, %v277_v60, 0.0  ;;  %v333_v4 = vsel %vm289_vm3, %v278_v63, 0.0  ;;  %v280_v5 = vld [vmem:[%s884_s13 + $0xc0] sm:$0xff]  ;;  %v335_v7 = vsel %vm289_vm3, %v279_v2, 0.0  ;;  %v281_v8 = vld [vmem:[%s884_s13 + $0xc8] sm:$0xff]  ;;  %v282_v11 = vld [vmem:[%s884_s13 + $0xd0] sm:$0xff] }
  0x23   : > { %v337_v10 = vsel %vm289_vm3, %v280_v5, 0.0  ;;  %v339_v13 = vsel %vm289_vm3, %v281_v8, 0.0  ;;  %v283_v14 = vld [vmem:[%s884_s13 + $0xd8] sm:$0xff]  ;;  %v341_v16 = vsel %vm289_vm3, %v282_v11, 0.0 }
  0x24   : > { %v300_v22 = vadd.f32 %v299_v17, %v298_v19  ;;  %v284_v17 = vld [vmem:[%s884_s13 + $0xe0] sm:$0xff]  ;;  %v343_v19 = vsel %vm289_vm3, %v283_v14, 0.0 }
  0x26   : > { %v302_v25 = vadd.f32 %v301_v20, %v300_v22  ;;  %v285_v20 = vld [vmem:[%s884_s13 + $0xe8] sm:$0xff]  ;;  %v345_v22 = vsel %vm289_vm3, %v284_v17, 0.0 }
  0x28   : > { %v304_v28 = vadd.f32 %v303_v23, %v302_v25  ;;  %v286_v23 = vld [vmem:[%s884_s13 + $0xf0] sm:$0xff]  ;;  %v347_v25 = vsel %vm289_vm3, %v285_v20, 0.0 }
  0x2a   : > { %v306_v31 = vadd.f32 %v305_v26, %v304_v28  ;;  %v287_v26 = vld [vmem:[%s884_s13 + $0xf8] sm:$0xff]  ;;  %v349_v28 = vsel %vm289_vm3, %v286_v23, 0.0  ;;  %s707_s13 = scalar_lea.vmem %s968_s8, 16 }
  0x2b   : > { %v351_v30 = vsel %vm289_vm3, %v287_v26, 0.0  ;;  %p708_p12 = scmp.ne.s32.totalorder %s968_s8, %s707_s13  ;;  %p715_p2 = scmp.lt.s32.totalorder %s713_s15, %s707_s13 }
  0x2c   : > { %v308_v34 = vadd.f32 %v307_v29, %v306_v31 }
  0x2d   : > { %p709_p13 = pnand %p708_p12, %p860_p4  ;;  %p716_p3 = por %p715_p2, %p714_p1 }
  0x2e   : > { %v310_v37 = vadd.f32 %v309_v32, %v308_v34 }
  0x2f   : > { %p710_p0 = pneg %p709_p13 }
  0x30   : > { %v312_v40 = vadd.f32 %v311_v35, %v310_v37 }
  0x31   : > { %p717_p5 = pnand %p716_p3, %p710_p0 }
  0x32   : > { %v314_v43 = vadd.f32 %v313_v38, %v312_v40  ;;  %v288_v38 = vld [vmem:[#allocation2] sm:$0x1] }
  0x34   : > { %v316_v46 = vadd.f32 %v315_v41, %v314_v43  ;;  %v447_v43 = vld [vmem:[%s1017_s3] sm:$0x3] }
  0x35   : > { %642 = vmatpush3.msk.msra.mxu1 %vm453_vm4, %v447_v43 }
  0x36   : > { %v318_v49 = vadd.f32 %v317_v44, %v316_v46  ;;  %v368_v44 = vld [vmem:[%s1016_s2] sm:$0x1] }
  0x38   : > { %v320_v52 = vadd.f32 %v319_v47, %v318_v49  ;;  %v448_v49 = vld [vmem:[%s1018_s4] sm:$0x1] }
  0x3a   : > { %v322_v55 = vadd.f32 %v321_v50, %v320_v52 }
  0x3c   : > { %v324_v58 = vadd.f32 %v323_v53, %v322_v55 }
  0x3e   : > { %v326_v61 = vadd.f32 %v325_v56, %v324_v58 }
  0x40   : > { %v328_v0 = vadd.f32 %v327_v59, %v326_v61 }
  0x42   : > { %v330_v3 = vadd.f32 %v329_v62, %v328_v0 }
  0x44   : > { %v332_v6 = vadd.f32 %v331_v1, %v330_v3 }
  0x46   : > { %v334_v9 = vadd.f32 %v333_v4, %v332_v6 }
  0x48   : > { %v336_v12 = vadd.f32 %v335_v7, %v334_v9 }
  0x4a   : > { %v338_v15 = vadd.f32 %v337_v10, %v336_v12 }
  0x4c   : > { %v340_v18 = vadd.f32 %v339_v13, %v338_v15 }
  0x4e   : > { %v342_v21 = vadd.f32 %v341_v16, %v340_v18 }
  0x50   : > { %v344_v24 = vadd.f32 %v343_v19, %v342_v21 }
  0x52   : > { %v346_v27 = vadd.f32 %v345_v22, %v344_v24 }
  0x54   : > { %v348_v29 = vadd.f32 %v347_v25, %v346_v27 }
  0x56   : > { %v350_v31 = vadd.f32 %v349_v28, %v348_v29 }
  0x58   : > { %v352_v32 = vadd.f32 %v351_v30, %v350_v31 }
  0x5a   : > { %v353_v33 = vrot.slane %v352_v32, 4 }
  0x5c   : > { %v354_v34 = vadd.f32 %v353_v33, %v352_v32 }
  0x5e   : > { %v355_v35 = vrot.slane %v354_v34, 2 }
  0x60   : > { %v356_v36 = vadd.f32 %v355_v35, %v354_v34 }
  0x62   : > { %v357_v37 = vrot.slane %v356_v36, 1 }
  0x64   : > { %v358_v39 = vadd.f32 %v357_v37, %v356_v36 }
  0x66   : > { %v359_v40 = vadd.f32 %v358_v39, %v288_v38 }
  0x68   : > { %361 = vst.msk [vmem:[#allocation2] sm:$0x1] %vm254_vm0, %v359_v40 }
  0x6f   : > { %v365_v41 = vld [vmem:[#allocation2] sm:$0x1] }
  0x70   : > { %v366_v42 = vmul.f32 0.00390625, %v365_v41 }
  0x72   : > { %639 = vmatmul.mubr.msk.f32.vlgmr.msra.gmra.mrb[0].mxu0 %vm289_vm3, %v366_v42 }
 0x145   : > { %v442_v45 = vpop.f32.mrb[0].mxu0 }
 0x146   : > { %v443_v46 = vadd.f32 %v442_v45, %v368_v44  ;;  %v640_v47 = vpop.f32.mrb[1].mxu0 }
 0x148   : > { %v446_v48 = vmax.f32 %v443_v46, 0.0 }
 0x14a   : > { %644 = vmatmul.mubr.msk.f32.vlgmr.msra.gmra.mrb[0].mxu1 %vm449_vm5, %v446_v48 }
 0x21d   : > { %v523_v50 = vpop.f32.mrb[0].mxu1 }
 0x21e   : > { %v524_v51 = vadd.f32 %v523_v50, %v448_v49  ;;  %v645_v52 = vpop.f32.mrb[1].mxu1 }
 0x220   : > { %v627_v53 = vmul.f32 -1.442695, %v524_v51 }
 0x222   : > { %703 = vpow2.f32 %v627_v53 }
 0x22c   : > { %v704_v54 = vpop.eup %703 }
 0x22d   : > { %v530_v55 = vadd.f32 1.0, %v704_v54 }
 0x22f   : > { %705 = vrcp.f32 %v530_v55 }
 0x239   : > { %v706_v56 = vpop.eup %705 }
 0x23a   : > { %533 = vst.msk [vmem:[%s239_s7] sm:$0x1] %vm254_vm0, %v706_v56 }
 0x23b   : > { %720 = shalt.err (!%p717_p5)
}
 0x23c   : > { %s721_s16 = scalar_lea.hbm %s966_s11, 16  ;;  %s725_s25 = scalar_lea.hbm %s1019_s5, 32 }
 0x23d   : > { %p722_p6 = scmp.ne.s32.totalorder %s966_s11, %s721_s16  ;;  %p726_p10 = scmp.lt.u32.totalorder %s966_s11, %s1019_s5 }
 0x23e   : > { %p727_p11 = scmp.lt.u32.totalorder %s725_s25, %s721_s16  ;;  %p729_p13 = scmp.lt.u32.totalorder %s721_s16, %s966_s11 }
 0x23f   : > { %p723_p7 = pnand %p722_p6, %p860_p4 }
 0x240   : > { %p728_p12 = por %p727_p11, %p726_p10 }
 0x241   : > { %p724_p9 = pneg %p723_p7 }
 0x242   : > { %p730_p0 = por %p729_p13, %p728_p12 }
 0x244   : > { %p731_p1 = pnand %p730_p0, %p724_p9 }
 0x246   : > { %734 = shalt.err (!%p731_p1)
}
 0x247   : > { %646 = dma.vmem_to_hbm [thread:$0]  (%p860_p4), %s968_s8, 16, %s966_s11, %s535_s12  }
 0x248 PF: > { %p652_p2 = scmp.ge.s32.totalorder %s785_s23, 2  ;;  %s559_s7 = sand.u32 1, %s765_s18  }
 0x249   : > { %s560_s9 = scalar_lea.sflag [#allocation4], %s559_s7 }
 0x24a   : > { %p649_p3 = pnand %p652_p2, %p867_p8 }
 0x24c   : > { %760 = dma.done.wait (!%p649_p3), %s560_s9, 16  }
 0x24d   : > { %762 = vsyncadd (!%p649_p3), %s560_s9, 4294967280  ;;  %s18_s23 = sadd.s32 1, %s785_s23   ;;  %s1022_s18 = smov %s769_s19 }
 0x24e   : > { %p15_p5 = scmp.ge.s32.totalorder %s18_s23, 4   ;;  %s1023_s19 = smov %s773_s20 }
 0x24f   : > { %s1024_s20 = smov %s873_s6  ;;  %s1025_s21 = smov %s781_s22 }
 0x250   : > { %s1026_s22 = smov %s1028_s26  ;;  %17 = sbr.rel (!%p15_p5) target bundleno = 4 (0x4), region = 83 }
 0x257   :  { %564 = vsyncpa [#allocation4], 1 }
 0x258   :  { %566 = vsyncpa [#allocation4 + $0x1], 1 }

</bundles_post_ra>
